<compile_context>
chip_gen: v7x
topology: tpu7x:2x2x1
jax: 0.10.0
libtpu: 0.0.40
codegen_flags: <defaults>
</compile_context>

<pallas_src>
import functools

import jax
import jax.numpy as jnp
from jax import lax
from jax.experimental import pallas as pl
from jax.experimental.pallas import tpu as pltpu


_UNROLL_LAYER_LIMIT = 4  # statically unroll hidden layers up to this depth


def fcn_kernel(x_ref, w0_ref, b0_ref, wh_ref, bh_ref, we_ref, be_ref, o_ref):
    # x_ref : (tile_m, n_in)    batch-major, same layout as the caller's x
    # w0_ref: (n_hid, n_in)     PyTorch (out, in) layout
    # b0_ref: (n_hid, 1)
    # wh_ref: (L-1, n_hid, n_hid)
    # bh_ref: (L-1, n_hid, 1)
    # we_ref: (n_out, n_hid)
    # be_ref: (n_out, 1)
    # o_ref : (n_out, tile_m)   lane-dense output slab
    x = x_ref[...]
    tile_m, n_in = x.shape
    n_hid = w0_ref.shape[0]

    # Put batch on the lane (last) dim inside the kernel. This (tile_m, n_in)
    # -> (n_in, tile_m) transpose of a tiny tile runs on the otherwise-idle
    # XLU and replaces the wrapper-side XLA transpose (separate dispatch +
    # HBM round-trip) the previous version paid for.
    xt = x.T  # (n_in, tile_m)

    # --- First layer: K = n_in is tiny (1-3 for PINNs). Use VPU FMAs
    #     (outer products) instead of a padded-to-128 MXU contraction. ---
    acc = jnp.broadcast_to(b0_ref[...], (n_hid, tile_m))
    for k in range(n_in):  # statically unrolled, n_in is tiny
        acc = acc + w0_ref[:, k:k + 1] * xt[k:k + 1, :]
    h = jnp.tanh(acc)

    # --- Hidden layers: (N_LAYERS - 1) x [Linear(H, H) + tanh] on the MXU. ---
    n_stack = wh_ref.shape[0]

    def layer(l, h):
        return jnp.tanh(
            jnp.dot(wh_ref[l], h, preferred_element_type=jnp.float32) + bh_ref[l]
        )

    if n_stack <= _UNROLL_LAYER_LIMIT:
        # Shallow nets: static unroll gives the LLO scheduler full visibility.
        for l in range(n_stack):
            h = layer(l, h)
    else:
        # Deep nets: fori_loop bounds live ranges / code size. wh_ref[l] /
        # bh_ref[l] with a dynamic leading index stay cheap VMEM loads.
        h = lax.fori_loop(0, n_stack, layer, h)

    # TODO(synk): for H >= ~512 / many layers, stream Wh per layer (trailing
    # 'arbitrary' grid axis or pltpu.emit_pipeline, bf16 operands) instead of
    # keeping the full f32 stack VMEM-resident. Not needed at PINN sizes.

    # --- Output layer: Linear(N_HIDDEN, N_OUTPUT), no activation. ---
    o_ref[...] = (
        jnp.dot(we_ref[...], h, preferred_element_type=jnp.float32) + be_ref[...]
    ).astype(o_ref.dtype)


def _pick_tile_m(B):
    """Single grid step by default (grid-step overhead dominates at PINN
    sizes; v5e/v6e have a single TensorCore so splitting buys nothing).
    Cap tiles at 512 for large batches so activations + matmul partials stay
    inside the 64-vreg file and x/out DMAs stay overlapped by the pipeline."""
    cap = 512
    if B <= cap:
        return B
    for t in (512, 384, 256, 128):  # lane-aligned divisors, largest first
        if B % t == 0:
            return t
    return B  # ragged batch: fall back to one big tile (always valid)


def fcn_forward(x, params, *, tile_m=None):
    """x: (B, N_INPUT) f32 (PyTorch convention). Returns (B, N_OUTPUT).
    Wrap in jax.jit so the trailing output reshape/transpose fuses upstream."""
    w0, b0, wh, bh, we, be = (
        params["w0"], params["b0"], params["wh"], params["bh"],
        params["we"], params["be"],
    )
    B, n_in = x.shape
    n_hid = w0.shape[0]
    n_out = we.shape[0]
    n_stack = wh.shape[0]

    if tile_m is None:
        tile_m = _pick_tile_m(B)
    assert B % tile_m == 0, "batch must be divisible by tile_m"
    assert tile_m % 8 == 0 or tile_m == B, "tile_m must be sublane-aligned"

    # Explicit scoped-VMEM limit: enough for the double-buffered x/out blocks
    # plus the (double-buffered) resident weight stack, capped at 48 MiB so we
    # leave headroom on v7x's 64 MiB physical VMEM for Mosaic scratch.
    weight_bytes = sum(int(a.size) * a.dtype.itemsize
                       for a in (w0, b0, wh, bh, we, be))
    io_bytes = 4 * (n_in + n_out) * tile_m
    act_bytes = 4 * n_hid * tile_m
    vmem_limit = int(min(
        48 * 1024 * 1024,
        max(16 * 1024 * 1024, 2 * (2 * io_bytes + 2 * weight_bytes + 4 * act_bytes)),
    ))

    # Advisory cost hint so XLA schedules/overlaps this tiny custom call
    # correctly inside a larger step instead of treating it as opaque.
    flops = 2 * B * (n_hid * n_in + n_stack * n_hid * n_hid + n_out * n_hid)
    transcendentals = B * n_hid * (1 + n_stack)            # tanh count
    bytes_accessed = 4 * (B * (n_in + n_out)) + weight_bytes
    cost = pl.CostEstimate(flops=flops, transcendentals=transcendentals,
                           bytes_accessed=bytes_accessed)

    def const_spec(shape):
        # Full-array block, constant (0,...) index map: never changes across
        # the grid, so Mosaic keeps it resident.
        rank = len(shape)
        return pl.BlockSpec(shape, lambda i, _r=rank: (0,) * _r)

    out_t = pl.pallas_call(
        fcn_kernel,
        out_shape=jax.ShapeDtypeStruct((n_out, B), x.dtype),
        grid_spec=pltpu.PrefetchScalarGridSpec(
            num_scalar_prefetch=0,
            grid=(B // tile_m,),
            in_specs=[
                pl.BlockSpec((tile_m, n_in), lambda i: (i, 0)),   # x tile (batch-major)
                const_spec((n_hid, n_in)),                        # W0  (out, in)
                const_spec((n_hid, 1)),                           # b0
                const_spec((n_stack, n_hid, n_hid)),              # Wh stack
                const_spec((n_stack, n_hid, 1)),                  # bh stack
                const_spec((n_out, n_hid)),                       # We
                const_spec((n_out, 1)),                           # be
            ],
            out_specs=pl.BlockSpec((n_out, tile_m), lambda i: (0, i)),  # lane-dense out
        ),
        compiler_params=pltpu.CompilerParams(
            dimension_semantics=("parallel",),
            vmem_limit_bytes=vmem_limit,
        ),
        cost_estimate=cost,
    )(x, w0, b0, wh, bh, we, be)

    # Back to PyTorch (B, n_out). For the common PINN case n_out == 1 this is
    # a pure reshape (no data movement); otherwise it's a transpose that fuses
    # with downstream ops under jit.
    if n_out == 1:
        return out_t.reshape(B, 1)
    return out_t.T


def init_fcn_params(key, n_input, n_output, n_hidden, n_layers):
    """Deterministic synthetic init in native PyTorch Linear layout:
    W is (out, in); biases stored as (out, 1) columns for the transposed kernel."""
    ks = jax.random.split(key, 6)
    scale = 0.1
    return {
        "w0": scale * jax.random.normal(ks[0], (n_hidden, n_input), jnp.float32),
        "b0": (scale * jax.random.normal(ks[1], (n_hidden,), jnp.float32)
               ).reshape(n_hidden, 1),
        "wh": scale * jax.random.normal(ks[2], (n_layers - 1, n_hidden, n_hidden),
                                        jnp.float32),
        "bh": (scale * jax.random.normal(ks[3], (n_layers - 1, n_hidden), jnp.float32)
               ).reshape(n_layers - 1, n_hidden, 1),
        "we": scale * jax.random.normal(ks[4], (n_output, n_hidden), jnp.float32),
        "be": (scale * jax.random.normal(ks[5], (n_output,), jnp.float32)
               ).reshape(n_output, 1),
    }


def fcn_reference(x, params):
    """Plain-JAX reference matching the PyTorch forward (x: (B, n_in))."""
    h = jnp.tanh(x @ params["w0"].T + params["b0"].T)
    for l in range(params["wh"].shape[0]):
        h = jnp.tanh(h @ params["wh"][l].T + params["bh"][l].T)
    return h @ params["we"].T + params["be"].T


if __name__ == "__main__":
    N_INPUT, N_OUTPUT, N_HIDDEN, N_LAYERS = 2, 1, 32, 3
    BATCH = 256

    key = jax.random.PRNGKey(0)
    kx, kp = jax.random.split(key)
    x = jax.random.normal(kx, (BATCH, N_INPUT), jnp.float32)
    params = init_fcn_params(kp, N_INPUT, N_OUTPUT, N_HIDDEN, N_LAYERS)

    fwd = jax.jit(fcn_forward)   # fuses the trailing reshape/transpose upstream
    out = fwd(x, params)
    out = jax.block_until_ready(out)

    ref = fcn_reference(x, params)
    assert out.shape == (BATCH, N_OUTPUT)
    assert jnp.allclose(out, ref, atol=1e-5, rtol=1e-5), "mismatch vs reference"

    print("KERNEL_OK")
</pallas_src>

<mosaic_0001>
module attributes {stable_mosaic.version = 11 : i64} {
  func.func @fcn_kernel(%arg0: i32, %arg1: memref<256x2xf32, #tpu.memory_space<vmem>>, %arg2: memref<32x2xf32, #tpu.memory_space<vmem>>, %arg3: memref<32x1xf32, #tpu.memory_space<vmem>>, %arg4: memref<2x32x32xf32, #tpu.memory_space<vmem>>, %arg5: memref<2x32x1xf32, #tpu.memory_space<vmem>>, %arg6: memref<1x32xf32, #tpu.memory_space<vmem>>, %arg7: memref<1x1xf32, #tpu.memory_space<vmem>>, %arg8: memref<1x256xf32, #tpu.memory_space<vmem>>) attributes {dimension_semantics = [#tpu.dimension_semantics<parallel>], iteration_bounds = array<i64: 1>, scalar_prefetch = 0 : i64, scratch_operands = 0 : i64, tpu.core_type = #tpu.core_type<tc>, window_params = [{transform_indices = @transform_0, window_bounds = array<i64: 256, 2>}, {pipeline_mode = #tpu.pipeline_mode<synchronous>, transform_indices = @transform_1, window_bounds = array<i64: 32, 2>}, {pipeline_mode = #tpu.pipeline_mode<synchronous>, transform_indices = @transform_2, window_bounds = array<i64: 32, 1>}, {pipeline_mode = #tpu.pipeline_mode<synchronous>, transform_indices = @transform_3, window_bounds = array<i64: 2, 32, 32>}, {pipeline_mode = #tpu.pipeline_mode<synchronous>, transform_indices = @transform_4, window_bounds = array<i64: 2, 32, 1>}, {pipeline_mode = #tpu.pipeline_mode<synchronous>, transform_indices = @transform_5, window_bounds = array<i64: 1, 32>}, {pipeline_mode = #tpu.pipeline_mode<synchronous>, transform_indices = @transform_6, window_bounds = array<i64: 1, 1>}, {transform_indices = @transform_7, window_bounds = array<i64: 1, 256>}]} {
    %c0 = arith.constant 0 : index
    %c0_0 = arith.constant 0 : index
    %0 = vector.load %arg1[%c0, %c0_0] : memref<256x2xf32, #tpu.memory_space<vmem>>, vector<256x2xf32>
    %1 = tpu.transpose %0, [1, 0] : vector<256x2xf32> -> vector<2x256xf32>
    %c0_1 = arith.constant 0 : index
    %c0_2 = arith.constant 0 : index
    %2 = vector.load %arg3[%c0_1, %c0_2] : memref<32x1xf32, #tpu.memory_space<vmem>>, vector<32x1xf32>
    %3 = vector.shape_cast %2 : vector<32x1xf32> to vector<32x1xf32>
    %4 = vector.broadcast %3 : vector<32x1xf32> to vector<32x256xf32>
    %c0_3 = arith.constant 0 : index
    %c0_4 = arith.constant 0 : index
    %5 = vector.load %arg2[%c0_3, %c0_4] : memref<32x2xf32, #tpu.memory_space<vmem>>, vector<32x1xf32>
    %6 = vector.extract_strided_slice %1 {offsets = [0, 0], sizes = [1, 256], strides = [1, 1]} : vector<2x256xf32> to vector<1x256xf32>
    %7 = vector.broadcast %5 : vector<32x1xf32> to vector<32x256xf32>
    %8 = vector.broadcast %6 : vector<1x256xf32> to vector<32x256xf32>
    %9 = arith.mulf %7, %8 : vector<32x256xf32>
    %10 = arith.addf %4, %9 : vector<32x256xf32>
    %c0_5 = arith.constant 0 : index
    %c1 = arith.constant 1 : index
    %11 = vector.load %arg2[%c0_5, %c1] : memref<32x2xf32, #tpu.memory_space<vmem>>, vector<32x1xf32>
    %12 = vector.extract_strided_slice %1 {offsets = [1, 0], sizes = [1, 256], strides = [1, 1]} : vector<2x256xf32> to vector<1x256xf32>
    %13 = vector.broadcast %11 : vector<32x1xf32> to vector<32x256xf32>
    %14 = vector.broadcast %12 : vector<1x256xf32> to vector<32x256xf32>
    %15 = arith.mulf %13, %14 : vector<32x256xf32>
    %16 = arith.addf %10, %15 : vector<32x256xf32>
    %17 = math.tanh %16 : vector<32x256xf32>
    %c0_6 = arith.constant 0 : index
    %c0_7 = arith.constant 0 : index
    %c0_8 = arith.constant 0 : index
    %18 = vector.load %arg4[%c0_6, %c0_7, %c0_8] : memref<2x32x32xf32, #tpu.memory_space<vmem>>, vector<1x32x32xf32>
    %19 = vector.shape_cast %18 : vector<1x32x32xf32> to vector<32x32xf32>
    %cst = arith.constant dense<0.000000e+00> : vector<32x256xf32>
    %20 = tpu.matmul %19, %17, %cst {dimension_numbers = #tpu.dot_dimension_numbers<[1], [0], [0], [1], [0, 0, 1, 1], [], []>} : vector<32x32xf32>, vector<32x256xf32>, vector<32x256xf32> -> vector<32x256xf32>
    %c0_9 = arith.constant 0 : index
    %c0_10 = arith.constant 0 : index
    %c0_11 = arith.constant 0 : index
    %21 = vector.load %arg5[%c0_9, %c0_10, %c0_11] : memref<2x32x1xf32, #tpu.memory_space<vmem>>, vector<1x32x1xf32>
    %22 = vector.shape_cast %21 : vector<1x32x1xf32> to vector<32x1xf32>
    %23 = vector.broadcast %22 : vector<32x1xf32> to vector<32x256xf32>
    %24 = arith.addf %20, %23 : vector<32x256xf32>
    %25 = math.tanh %24 : vector<32x256xf32>
    %c1_12 = arith.constant 1 : index
    %c0_13 = arith.constant 0 : index
    %c0_14 = arith.constant 0 : index
    %26 = vector.load %arg4[%c1_12, %c0_13, %c0_14] : memref<2x32x32xf32, #tpu.memory_space<vmem>>, vector<1x32x32xf32>
    %27 = vector.shape_cast %26 : vector<1x32x32xf32> to vector<32x32xf32>
    %cst_15 = arith.constant dense<0.000000e+00> : vector<32x256xf32>
    %28 = tpu.matmul %27, %25, %cst_15 {dimension_numbers = #tpu.dot_dimension_numbers<[1], [0], [0], [1], [0, 0, 1, 1], [], []>} : vector<32x32xf32>, vector<32x256xf32>, vector<32x256xf32> -> vector<32x256xf32>
    %c1_16 = arith.constant 1 : index
    %c0_17 = arith.constant 0 : index
    %c0_18 = arith.constant 0 : index
    %29 = vector.load %arg5[%c1_16, %c0_17, %c0_18] : memref<2x32x1xf32, #tpu.memory_space<vmem>>, vector<1x32x1xf32>
    %30 = vector.shape_cast %29 : vector<1x32x1xf32> to vector<32x1xf32>
    %31 = vector.broadcast %30 : vector<32x1xf32> to vector<32x256xf32>
    %32 = arith.addf %28, %31 : vector<32x256xf32>
    %33 = math.tanh %32 : vector<32x256xf32>
    %c0_19 = arith.constant 0 : index
    %c0_20 = arith.constant 0 : index
    %34 = vector.load %arg6[%c0_19, %c0_20] : memref<1x32xf32, #tpu.memory_space<vmem>>, vector<1x32xf32>
    %cst_21 = arith.constant dense<0.000000e+00> : vector<1x256xf32>
    %35 = tpu.matmul %34, %33, %cst_21 {dimension_numbers = #tpu.dot_dimension_numbers<[1], [0], [0], [1], [0, 0, 1, 1], [], []>} : vector<1x32xf32>, vector<32x256xf32>, vector<1x256xf32> -> vector<1x256xf32>
    %c0_22 = arith.constant 0 : index
    %c0_23 = arith.constant 0 : index
    %36 = vector.load %arg7[%c0_22, %c0_23] : memref<1x1xf32, #tpu.memory_space<vmem>>, vector<1x1xf32>
    %37 = vector.broadcast %36 : vector<1x1xf32> to vector<1x256xf32>
    %38 = arith.addf %35, %37 : vector<1x256xf32>
    %c0_24 = arith.constant 0 : index
    %c0_25 = arith.constant 0 : index
    %39 = vector.load %arg8[%c0_24, %c0_25] : memref<1x256xf32, #tpu.memory_space<vmem>>, vector<1x256xf32>
    tpu.vector_store %arg8[%c0_24, %c0_25], %38 {strides = array<i32>} : memref<1x256xf32, #tpu.memory_space<vmem>>, vector<1x256xf32>,
    return
  }
  func.func @transform_0(%arg0: i32) -> (i32, i32) {
    %c0_i32 = arith.constant 0 : i32
    %c0_i32_0 = arith.constant 0 : i32
    return %arg0, %c0_i32 : i32, i32
  }
  func.func @transform_1(%arg0: i32) -> (i32, i32) {
    %c0_i32 = arith.constant 0 : i32
    %c0_i32_0 = arith.constant 0 : i32
    %c0_i32_1 = arith.constant 0 : i32
    return %c0_i32, %c0_i32_0 : i32, i32
  }
  func.func @transform_2(%arg0: i32) -> (i32, i32) {
    %c0_i32 = arith.constant 0 : i32
    %c0_i32_0 = arith.constant 0 : i32
    %c0_i32_1 = arith.constant 0 : i32
    return %c0_i32, %c0_i32_0 : i32, i32
  }
  func.func @transform_3(%arg0: i32) -> (i32, i32, i32) {
    %c0_i32 = arith.constant 0 : i32
    %c0_i32_0 = arith.constant 0 : i32
    %c0_i32_1 = arith.constant 0 : i32
    %c0_i32_2 = arith.constant 0 : i32
    return %c0_i32, %c0_i32_0, %c0_i32_1 : i32, i32, i32
  }
  func.func @transform_4(%arg0: i32) -> (i32, i32, i32) {
    %c0_i32 = arith.constant 0 : i32
    %c0_i32_0 = arith.constant 0 : i32
    %c0_i32_1 = arith.constant 0 : i32
    %c0_i32_2 = arith.constant 0 : i32
    return %c0_i32, %c0_i32_0, %c0_i32_1 : i32, i32, i32
  }
  func.func @transform_5(%arg0: i32) -> (i32, i32) {
    %c0_i32 = arith.constant 0 : i32
    %c0_i32_0 = arith.constant 0 : i32
    %c0_i32_1 = arith.constant 0 : i32
    return %c0_i32, %c0_i32_0 : i32, i32
  }
  func.func @transform_6(%arg0: i32) -> (i32, i32) {
    %c0_i32 = arith.constant 0 : i32
    %c0_i32_0 = arith.constant 0 : i32
    %c0_i32_1 = arith.constant 0 : i32
    return %c0_i32, %c0_i32_0 : i32, i32
  }
  func.func @transform_7(%arg0: i32) -> (i32, i32) {
    %c0_i32 = arith.constant 0 : i32
    %c0_i32_0 = arith.constant 0 : i32
    return %c0_i32, %arg0 : i32, i32
  }
}

</mosaic_0001>

<bundles_post_ra>
// kernel: fcn_forward.1
= control target key start
LH: loop header
LB: loop body
LE: loop exit
PB: predicated region body
PF: predicated region fallthrough
CT: control target
= control target key end

     0   :  { %s1036_s0 = inlined_call_operand.vmem [shape: f32[256,2], index: 0, kind: input, shape index: {}]   ;;  %s1037_s1 = inlined_call_operand.vmem [shape: f32[32,2], index: 1, kind: input, shape index: {}]   ;;  %s1038_s2 = inlined_call_operand.vmem [shape: f32[32,1], index: 2, kind: input, shape index: {}]   ;;  %s1039_s3 = inlined_call_operand.vmem [shape: f32[2,32,32], index: 3, kind: input, shape index: {}]   ;;  %s1040_s4 = inlined_call_operand.vmem [shape: f32[2,32,1], index: 4, kind: input, shape index: {}]   ;;  %s1041_s5 = inlined_call_operand.vmem [shape: f32[1,32], index: 5, kind: input, shape index: {}]   ;;  %s1042_s6 = inlined_call_operand.<no memory space> [shape: f32[1,1], index: 6, kind: input, shape index: {}]   ;;  %s1043_s7 = inlined_call_operand.hbm [shape: f32[1,256], index: 7, kind: output, shape index: {}]  }
   0x1   :  { %v12_v0 = vstv %s1042_s6 }
   0x2   :  { %13 = vst [vmem:[#allocation2] sm:$0x1] %v12_v0 }
   0x3   :  { %v149_v1 = vld [vmem:[%s1037_s1] sm:$0xff]  ;;  %v770_v3 = vmov 0   ;;  %v150_v4 = vld [vmem:[%s1037_s1 + $0x8] sm:$0xff]  ;;  %v152_v6 = vld [vmem:[%s1037_s1 + $0x18] sm:$0xff]  ;;  %v771_v7 = vmov 1  }
   0x4   :  { %v125_v2 = vld [vmem:[%s1038_s2] sm:$0xff]  ;;  %691 = vset.pattern.permute.xlu1 %v770_v3  ;;  %690 = vset.pattern.permute.xlu0 %v770_v3  ;;  %v126_v5 = vld [vmem:[%s1038_s2 + $0x8] sm:$0xff]  ;;  %v151_v8 = vld [vmem:[%s1037_s1 + $0x10] sm:$0xff] }
   0x5   :  { %155 = vperm.xlu0 %690, %v149_v1   ;;  %131 = vperm.xlu1 %691, %v125_v2  }
   0x9   :  { %160 = vperm.xlu0 %690, %v150_v4   ;;  %136 = vperm.xlu1 %691, %v126_v5  }
   0xd   :  { %170 = vperm.xlu0 %690, %v152_v6   ;;  %692 = vset.pattern.permute.xlu1 %v771_v7 }
   0xe   :  { %202 = vperm.xlu1 %692, %v150_v4  }
   0xf   :  { %14 = vsyncpa [#allocation4], 0  ;;  %v127_v9 = vld [vmem:[%s1038_s2 + $0x10] sm:$0xff]  ;;  %v128_v10 = vld [vmem:[%s1038_s2 + $0x18] sm:$0xff]  ;;  %v772_v34 = vmov 0.0   ;;  %v173_v61 = vlaneseq  ;;  %vm273_vm0 = vcmask 261120  }
  0x10   :  { %v29_v11 = vld [vmem:[%s1036_s0] sm:$0xff]  ;;  %v30_v12 = vld [vmem:[%s1036_s0 + $0x8] sm:$0xff]  ;;  %v31_v13 = vld [vmem:[%s1036_s0 + $0x10] sm:$0xff]  ;;  %350 = vmatprep.mubr.f32.mxu0 %v772_v34  ;;  %489 = vmatprep.mubr.f32.mxu1 %v772_v34  ;;  %s774_s9 = smov [#allocation3]  }
  0x11   :  { %694 = vset.pattern.permute.xlu0 %v771_v7  ;;  %v32_v14 = vld [vmem:[%s1036_s0 + $0x18] sm:$0xff]  ;;  %v33_v15 = vld [vmem:[%s1036_s0 + $0x20] sm:$0xff]  ;;  %v34_v16 = vld [vmem:[%s1036_s0 + $0x28] sm:$0xff]  ;;  %v970_v62 = vshrl.u32 %v173_v61, 7  ;;  %s636_s10 = sshll.u32 %s774_s9, 4  ;;  %vm627_vm1 = vcmp.lt.s32.totalorder %v173_v61, 256  ;;  %s637_s10 = int_to_ptr.vmem [resolvable:$true] %s636_s10 }
  0x12   :  { %198 = vperm.xlu0 %694, %v149_v1   ;;  %693 = vset.pattern.permute.xlu1 %v770_v3  ;;  %v45_v17 = vld [vmem:[%s1036_s0 + $0x80] sm:$0xff]  ;;  %v35_v18 = vld [vmem:[%s1036_s0 + $0x30] sm:$0xff]  ;;  %v46_v19 = vld [vmem:[%s1036_s0 + $0x88] sm:$0xff]  ;;  %p751_p1 = scmp.lt.s32.totalorder %s637_s10, %s637_s10 }
  0x13   :  { %165 = vperm.xlu1 %693, %v151_v8   ;;  %v36_v20 = vld [vmem:[%s1036_s0 + $0x38] sm:$0xff]  ;;  %v47_v21 = vld [vmem:[%s1036_s0 + $0x90] sm:$0xff]  ;;  %v37_v22 = vld [vmem:[%s1036_s0 + $0x40] sm:$0xff]  ;;  %v973_v1 = vsub.s32 0, %v970_v62  ;;  %v215_v5 = vsub.s32 1, %v970_v62 }
  0x14   :  { %v48_v23 = vld [vmem:[%s1036_s0 + $0x98] sm:$0xff]  ;;  %v38_v24 = vld [vmem:[%s1036_s0 + $0x48] sm:$0xff]  ;;  %v49_v25 = vld [vmem:[%s1036_s0 + $0xa0] sm:$0xff] }
  0x15   :  { %v39_v26 = vld [vmem:[%s1036_s0 + $0x50] sm:$0xff]  ;;  %v50_v27 = vld [vmem:[%s1036_s0 + $0xa8] sm:$0xff]  ;;  %v40_v28 = vld [vmem:[%s1036_s0 + $0x58] sm:$0xff] }
  0x16   :  { %206 = vperm.xlu0 %694, %v151_v8   ;;  %v51_v29 = vld [vmem:[%s1036_s0 + $0xb0] sm:$0xff]  ;;  %v41_v30 = vld [vmem:[%s1036_s0 + $0x60] sm:$0xff]  ;;  %v52_v31 = vld [vmem:[%s1036_s0 + $0xb8] sm:$0xff] }
  0x17   :  { %141 = vperm.xlu1 %693, %v127_v9   ;;  %v42_v32 = vld [vmem:[%s1036_s0 + $0x68] sm:$0xff]  ;;  %v53_v33 = vld [vmem:[%s1036_s0 + $0xc0] sm:$0xff]  ;;  %v43_v35 = vld [vmem:[%s1036_s0 + $0x70] sm:$0xff] }
  0x18   :  { %v54_v36 = vld [vmem:[%s1036_s0 + $0xc8] sm:$0xff]  ;;  %v44_v37 = vld [vmem:[%s1036_s0 + $0x78] sm:$0xff]  ;;  %v55_v38 = vld [vmem:[%s1036_s0 + $0xd0] sm:$0xff] }
  0x19   :  { %v56_v39 = vld [vmem:[%s1036_s0 + $0xd8] sm:$0xff]  ;;  %v57_v40 = vld [vmem:[%s1036_s0 + $0xe0] sm:$0xff]  ;;  %v58_v41 = vld [vmem:[%s1036_s0 + $0xe8] sm:$0xff] }
  0x1a   :  { %v59_v42 = vld [vmem:[%s1036_s0 + $0xf0] sm:$0xff]  ;;  %v60_v43 = vld [vmem:[%s1036_s0 + $0xf8] sm:$0xff]  ;;  %v249_v44 = vld [vmem:[%s1040_s4] sm:$0xff] }
  0x1b   :  { %146 = vperm.xlu1 %693, %v128_v10   ;;  %v252_v45 = vld [vmem:[%s1040_s4 + $0x18] sm:$0xff]  ;;  %v653_v46 = vld [vmem:[%s1040_s4 + $0x28] sm:$0xff]  ;;  %v251_v51 = vld [vmem:[%s1040_s4 + $0x10] sm:$0xff] }
  0x1c   :  { %v250_v48 = vld [vmem:[%s1040_s4 + $0x8] sm:$0xff]  ;;  %v655_v50 = vld [vmem:[%s1040_s4 + $0x38] sm:$0xff]  ;;  %v652_v54 = vld [vmem:[%s1040_s4 + $0x20] sm:$0xff] }
  0x1d   :  { %v654_v56 = vld [vmem:[%s1040_s4 + $0x30] sm:$0xff]  ;;  %v523_v58 = vld [vmem:[#allocation2] sm:$0x1] }
  0x1f   :  { %695 = vset.pattern.permute.xlu1 %v771_v7 }
  0x20   :  { %210 = vperm.xlu1 %695, %v152_v6  }
  0x34   :  { %61 = vxpose.xlu0.b32.start [1/16] (narrow) %v29_v11, 8 }
  0x38   :  { %62 = vxpose.xlu0.b32.cont [2/16] (narrow) %v30_v12, 8 }
  0x3c   :  { %63 = vxpose.xlu0.b32.cont [3/16] (narrow) %v31_v13, 8 }
  0x40   :  { %64 = vxpose.xlu0.b32.cont [4/16] (narrow) %v32_v14, 8 }
  0x44   :  { %65 = vxpose.xlu0.b32.cont [5/16] (narrow) %v33_v15, 8 }
  0x48   :  { %66 = vxpose.xlu0.b32.cont [6/16] (narrow) %v34_v16, 8 }
  0x49   :  { %93 = vxpose.xlu1.b32.start [1/16] (narrow) %v45_v17, 8 }
  0x4c   :  { %67 = vxpose.xlu0.b32.cont [7/16] (narrow) %v35_v18, 8 }
  0x4d   :  { %94 = vxpose.xlu1.b32.cont [2/16] (narrow) %v46_v19, 8 }
  0x50   :  { %68 = vxpose.xlu0.b32.cont [8/16] (narrow) %v36_v20, 8 }
  0x51   :  { %95 = vxpose.xlu1.b32.cont [3/16] (narrow) %v47_v21, 8 }
  0x54   :  { %69 = vxpose.xlu0.b32.cont [9/16] (narrow) %v37_v22, 8 }
  0x55   :  { %96 = vxpose.xlu1.b32.cont [4/16] (narrow) %v48_v23, 8 }
  0x58   :  { %70 = vxpose.xlu0.b32.cont [10/16] (narrow) %v38_v24, 8 }
  0x59   :  { %97 = vxpose.xlu1.b32.cont [5/16] (narrow) %v49_v25, 8 }
  0x5c   :  { %71 = vxpose.xlu0.b32.cont [11/16] (narrow) %v39_v26, 8 }
  0x5d   :  { %98 = vxpose.xlu1.b32.cont [6/16] (narrow) %v50_v27, 8 }
  0x60   :  { %72 = vxpose.xlu0.b32.cont [12/16] (narrow) %v40_v28, 8 }
  0x61   :  { %99 = vxpose.xlu1.b32.cont [7/16] (narrow) %v51_v29, 8 }
  0x64   :  { %73 = vxpose.xlu0.b32.cont [13/16] (narrow) %v41_v30, 8 }
  0x65   :  { %100 = vxpose.xlu1.b32.cont [8/16] (narrow) %v52_v31, 8 }
  0x68   :  { %74 = vxpose.xlu0.b32.cont [14/16] (narrow) %v42_v32, 8 }
  0x69   :  { %101 = vxpose.xlu1.b32.cont [9/16] (narrow) %v53_v33, 8 }
  0x6c   :  { %75 = vxpose.xlu0.b32.cont [15/16] (narrow) %v43_v35, 8 }
  0x6d   :  { %102 = vxpose.xlu1.b32.cont [10/16] (narrow) %v54_v36, 8 }
  0x70   :  { %76 = vxpose.xlu0.b32.end [16/16] (narrow) %v44_v37, 8 }
  0x71   :  { %103 = vxpose.xlu1.b32.cont [11/16] (narrow) %v55_v38, 8 }
  0x75   :  { %104 = vxpose.xlu1.b32.cont [12/16] (narrow) %v56_v39, 8 }
  0x79   :  { %105 = vxpose.xlu1.b32.cont [13/16] (narrow) %v57_v40, 8 }
  0x7d   :  { %106 = vxpose.xlu1.b32.cont [14/16] (narrow) %v58_v41, 8 }
  0x81   :  { %107 = vxpose.xlu1.b32.cont [15/16] (narrow) %v59_v42, 8 }
  0x84   :  { %v132_v47 = vpop.permute.xlu1 %131  ;;  %v156_v49 = vpop.permute.xlu0 %155 }
  0x85   :  { %108 = vxpose.xlu1.b32.end [16/16] (narrow) %v60_v43, 8 }
  0x88   :  { %v137_v52 = vpop.permute.xlu1 %136  ;;  %v161_v53 = vpop.permute.xlu0 %160 }
  0x8c   :  { %v171_v57 = vpop.permute.xlu0 %170 }
  0x8d   :  { %v203_v55 = vpop.permute.xlu1 %202 }
  0x91   :  { %v199_v59 = vpop.permute.xlu0 %198 }
  0x92   :  { %v166_v60 = vpop.permute.xlu1 %165 }
  0x95   :  { %v207_v63 = vpop.permute.xlu0 %206 }
  0x96   :  { %v142_v0 = vpop.permute.xlu1 %141 }
  0x99   :  { %696 = vset.pattern.permute.xlu0 %v770_v3 }
  0x9a   :  { %255 = vperm.xlu0 %696, %v249_v44  }
  0x9e   :  { %270 = vperm.xlu0 %696, %v252_v45  }
  0xa2   :  { %400 = vperm.xlu0 %696, %v653_v46  }
  0xa3   :  { %697 = vset.pattern.permute.xlu1 %v770_v3  ;;  %v147_v3 = vpop.permute.xlu1 %146 }
  0xa4   :  { %260 = vperm.xlu1 %697, %v250_v48  }
  0xa6   :  { %410 = vperm.xlu0 %696, %v655_v50  }
  0xa7   :  { %v211_v7 = vpop.permute.xlu1 %210 }
  0xa8   :  { %265 = vperm.xlu1 %697, %v251_v51  }
  0xac   :  { %395 = vperm.xlu1 %697, %v652_v54  }
  0xb0   :  { %405 = vperm.xlu1 %697, %v654_v56   ;;  %v245_v56 = vld [vmem:[%s1039_s3] sm:$0xff] }
  0xb4   :  { %526 = vperm.xlu1 %697, %v523_v58   ;;  %v77_v2 = vpop.trf.xlu0  ;;  %v247_v58 = vld [vmem:[%s1039_s3 + $0x10] sm:$0xff] }
  0xb5   :  { %v176_v4 = vrot.slane %v77_v2, %v973_v1  ;;  %v216_v9 = vrot.slane %v77_v2, %v215_v5 }
  0xb7   :  { %v181_v6 = vmul.f32 %v176_v4, %v156_v49  ;;  %v183_v8 = vmul.f32 %v176_v4, %v161_v53  ;;  %v221_v12 = vmul.f32 %v216_v9, %v199_v59  ;;  %v185_v16 = vmul.f32 %v176_v4, %v166_v60 }
  0xb8   :  { %v187_v17 = vmul.f32 %v176_v4, %v171_v57  ;;  %v223_v18 = vmul.f32 %v216_v9, %v203_v55  ;;  %v225_v39 = vmul.f32 %v216_v9, %v207_v63  ;;  %v227_v41 = vmul.f32 %v216_v9, %v211_v7 }
  0xb9   :  { %v189_v10 = vadd.f32 %v181_v6, %v132_v47  ;;  %v191_v11 = vadd.f32 %v183_v8, %v137_v52  ;;  %v193_v32 = vadd.f32 %v185_v16, %v142_v0 }
  0xba   :  { %v195_v33 = vadd.f32 %v187_v17, %v147_v3 }
  0xbb   :  { %v229_v19 = vadd.f32 %v221_v12, %v189_v10  ;;  %v231_v24 = vadd.f32 %v223_v18, %v191_v11  ;;  %v233_v42 = vadd.f32 %v225_v39, %v193_v32  ;;  %v649_v32 = vld [vmem:[%s1039_s3 + $0x28] sm:$0xff] }
  0xbc   :  { %v235_v43 = vadd.f32 %v227_v41, %v195_v33  ;;  %v650_v33 = vld [vmem:[%s1039_s3 + $0x30] sm:$0xff] }
  0xbd   :  { %698 = vtanh.f32 %v229_v19 }
  0xbe   :  { %700 = vtanh.f32 %v231_v24 }
  0xc7   :  { %v699_v44 = vpop.eup %698 }
  0xc8   :  { %v701_v45 = vpop.eup %700 }
  0xc9   :  { %v109_v13 = vpop.trf.xlu1 }
  0xca   :  { %v180_v14 = vrot.slane %v109_v13, %v973_v1  ;;  %v220_v15 = vrot.slane %v109_v13, %v215_v5 }
  0xcc   :  { %v182_v20 = vmul.f32 %v180_v14, %v156_v49  ;;  %v184_v21 = vmul.f32 %v180_v14, %v161_v53  ;;  %v186_v22 = vmul.f32 %v180_v14, %v166_v60  ;;  %v188_v23 = vmul.f32 %v180_v14, %v171_v57  ;;  %v246_v57 = vld [vmem:[%s1039_s3 + $0x8] sm:$0xff] }
  0xcd   :  { %v222_v25 = vmul.f32 %v220_v15, %v199_v59  ;;  %v226_v26 = vmul.f32 %v220_v15, %v207_v63  ;;  %v228_v27 = vmul.f32 %v220_v15, %v211_v7  ;;  %v224_v35 = vmul.f32 %v220_v15, %v203_v55  ;;  %v248_v59 = vld [vmem:[%s1039_s3 + $0x18] sm:$0xff] }
  0xce   :  { %v190_v28 = vadd.f32 %v182_v20, %v132_v47  ;;  %v192_v29 = vadd.f32 %v184_v21, %v137_v52  ;;  %v194_v30 = vadd.f32 %v186_v22, %v142_v0  ;;  %v196_v31 = vadd.f32 %v188_v23, %v147_v3 }
  0xcf   :  { %v663_v52 = vpack.c.bf16 %v701_v45, %v699_v44 }
  0xd0   :  { %v234_v36 = vadd.f32 %v226_v26, %v194_v30  ;;  %v236_v37 = vadd.f32 %v228_v27, %v196_v31  ;;  %v230_v38 = vadd.f32 %v222_v25, %v190_v28  ;;  %v232_v40 = vadd.f32 %v224_v35, %v192_v29  ;;  %v648_v31 = vld [vmem:[%s1039_s3 + $0x20] sm:$0xff]  ;;  %v651_v35 = vld [vmem:[%s1039_s3 + $0x38] sm:$0xff] }
  0xd2   :  { %702 = vtanh.f32 %v234_v36 }
  0xd3   :  { %704 = vtanh.f32 %v236_v37 }
  0xd4   :  { %706 = vtanh.f32 %v230_v38 }
  0xd5   :  { %708 = vtanh.f32 %v232_v40 }
  0xd6   :  { %710 = vtanh.f32 %v233_v42 }
  0xd7   :  { %712 = vtanh.f32 %v235_v43 }
  0xdc   :  { %v703_v46 = vpop.eup %702 }
  0xdd   :  { %v705_v47 = vpop.eup %704 }
  0xde   :  { %v707_v48 = vpop.eup %706  ;;  %v665_v54 = vpack.c.bf16 %v705_v47, %v703_v46 }
  0xdf   :  { %v709_v49 = vpop.eup %708 }
  0xe0   :  { %v661_v50 = vpack.c.bf16 %v709_v49, %v707_v48  ;;  %v711_v51 = vpop.eup %710 }
  0xe1   :  { %v713_v53 = vpop.eup %712 }
  0xe2   :  { %662 = vmatprep.subr.bf16.mxu0 %v661_v50  ;;  %v667_v55 = vpack.c.bf16 %v713_v53, %v711_v51 }
  0xe3   :  { %664 = vmatpush1.bf16.msra.mxu0 %v663_v52 }
  0xe4   :  { %666 = vmatprep.subr.bf16.mxu0 %v665_v54 }
  0xe7   :  { %668 = vmatpush1.bf16.msra.mxu0 %v667_v55 }
  0xea   :  { %644 = vmatmul.mubr.msk.f32.vlgmr.msra.gmra.mrb[0].mxu0 %vm273_vm0, %v245_v56 }
  0xeb   :  { %356 = vmatprep.mubr.f32.mxu0 %v772_v34 }
  0xee   :  { %645 = vmatmul.mubr.msk.f32.gmra.mrb[2].mxu0 %vm273_vm0, %v246_v57 }
  0xef   :  { %362 = vmatprep.mubr.f32.mxu0 %v772_v34 }
  0xf2   :  { %646 = vmatmul.mubr.msk.f32.gmra.mrb[4].mxu0 %vm273_vm0, %v247_v58 }
  0xf3   :  { %368 = vmatprep.mubr.f32.mxu0 %v772_v34 }
  0xf6   :  { %647 = vmatmul.mubr.msk.f32.gmra.mrb[6].mxu0 %vm273_vm0, %v248_v59 }
  0xf7   :  { %600 = vmatprep.mubr.f32.mxu0 %v772_v34 }
 0x119   :  { %v256_v60 = vpop.permute.xlu0 %255 }
 0x11d   :  { %v271_v14 = vpop.permute.xlu0 %270 }
 0x121   :  { %v401_v41 = vpop.permute.xlu0 %400 }
 0x123   :  { %v261_v3 = vpop.permute.xlu1 %260 }
 0x125   :  { %v411_v50 = vpop.permute.xlu0 %410 }
 0x127   :  { %v266_v9 = vpop.permute.xlu1 %265 }
 0x12b   :  { %v396_v36 = vpop.permute.xlu1 %395 }
 0x1bd   :  { %v352_v63 = vpop.f32.mrb[0].mxu0 }
 0x1be   :  { %v353_v0 = vadd.f32 %v352_v63, %v256_v60  ;;  %v354_v2 = vpop.f32.mrb[1].mxu0 }
 0x1bf   :  { %v355_v4 = vadd.f32 %v354_v2, %v256_v60 }
 0x1c0   :  { %714 = vtanh.f32 %v353_v0 }
 0x1c1   :  { %v358_v5 = vpop.f32.mrb[2].mxu0  ;;  %716 = vtanh.f32 %v355_v4 }
 0x1c2   :  { %v359_v6 = vadd.f32 %v358_v5, %v261_v3  ;;  %v360_v7 = vpop.f32.mrb[3].mxu0 }
 0x1c3   :  { %v361_v8 = vadd.f32 %v360_v7, %v261_v3  ;;  %v773_v7 = vmov 1966171168  }
 0x1c4   :  { %718 = vtanh.f32 %v359_v6  ;;  %v522_v6 = vld [vmem:[%s1041_s5] sm:$0x1]  ;;  %s746_s5 = scalar_lea.vmem %s637_s10, 32 }
 0x1c5   :  { %720 = vtanh.f32 %v361_v8  ;;  %v364_v10 = vpop.f32.mrb[4].mxu0  ;;  %v611_v8 = vunpack.c.l.s4 %v773_v7  ;;  %p747_p0 = scmp.ne.s32.totalorder %s637_s10, %s746_s5  ;;  %p752_p2 = scmp.lt.s32.totalorder %s746_s5, %s746_s5 }
 0x1c6   :  { %v365_v11 = vadd.f32 %v364_v10, %v266_v9  ;;  %v366_v12 = vpop.f32.mrb[5].mxu0 }
 0x1c7   :  { %v367_v13 = vadd.f32 %v366_v12, %v266_v9  ;;  %v612_v10 = vunpack.c.0.s8 %v611_v8  ;;  %p753_p3 = por %p752_p2, %p751_p1 }
 0x1c8   :  { %722 = vtanh.f32 %v365_v11 }
 0x1c9   :  { %v370_v15 = vpop.f32.mrb[6].mxu0  ;;  %724 = vtanh.f32 %v367_v13  ;;  %p754_p4 = pnand %p753_p3, %p747_p0 }
 0x1ca   :  { %v371_v16 = vadd.f32 %v370_v15, %v271_v14  ;;  %v372_v17 = vpop.f32.mrb[7].mxu0  ;;  %v715_v19 = vpop.eup %714 }
 0x1cb   :  { %v373_v18 = vadd.f32 %v372_v17, %v271_v14  ;;  %v717_v20 = vpop.eup %716 }
 0x1cc   :  { %726 = vtanh.f32 %v371_v16  ;;  %v615_v16 = vsub.s32 %v612_v10, %v970_v62 }
 0x1cd   :  { %728 = vtanh.f32 %v373_v18 }
 0x1ce   :  { %v719_v21 = vpop.eup %718 }
 0x1cf   :  { %v721_v22 = vpop.eup %720  ;;  %v671_v23 = vpack.c.bf16 %v719_v21, %v715_v19 }
 0x1d0   :  { %v669_v24 = vpack.c.bf16 %v721_v22, %v717_v20 }
 0x1d2   :  { %670 = vmatprep.subr.bf16.mxu1 %v669_v24  ;;  %v723_v25 = vpop.eup %722 }
 0x1d3   :  { %672 = vmatpush1.bf16.msra.mxu1 %v671_v23  ;;  %v725_v26 = vpop.eup %724 }
 0x1d6   :  { %v727_v27 = vpop.eup %726 }
 0x1d7   :  { %v729_v28 = vpop.eup %728  ;;  %v675_v29 = vpack.c.bf16 %v727_v27, %v723_v25 }
 0x1d8   :  { %v673_v30 = vpack.c.bf16 %v729_v28, %v725_v26 }
 0x1da   :  { %674 = vmatprep.subr.bf16.mxu1 %v673_v30 }
 0x1db   :  { %676 = vmatpush1.bf16.msra.mxu1 %v675_v29 }
 0x1de   :  { %656 = vmatmul.mubr.msk.f32.vlgmr.msra.gmra.mrb[0].mxu1 %vm273_vm0, %v648_v31 }
 0x1df   :  { %495 = vmatprep.mubr.f32.mxu1 %v772_v34 }
 0x1e2   :  { %657 = vmatmul.mubr.msk.f32.gmra.mrb[2].mxu1 %vm273_vm0, %v649_v32 }
 0x1e3   :  { %501 = vmatprep.mubr.f32.mxu1 %v772_v34 }
 0x1e6   :  { %658 = vmatmul.mubr.msk.f32.gmra.mrb[4].mxu1 %vm273_vm0, %v650_v33 }
 0x1e7   :  { %507 = vmatprep.mubr.f32.mxu1 %v772_v34  ;;  %v406_v34 = vpop.permute.xlu1 %405 }
 0x1ea   :  { %659 = vmatmul.mubr.msk.f32.gmra.mrb[6].mxu1 %vm273_vm0, %v651_v35 }
 0x1eb   :  { %v527_v9 = vpop.permute.xlu1 %526 }
 0x1ec   :  { %v532_v11 = vrot.slane %v527_v9, %v973_v1 }
 0x2b1   :  { %v491_v37 = vpop.f32.mrb[0].mxu1 }
 0x2b2   :  { %v492_v38 = vadd.f32 %v491_v37, %v396_v36  ;;  %v493_v39 = vpop.f32.mrb[1].mxu1 }
 0x2b3   :  { %v494_v40 = vadd.f32 %v493_v39, %v396_v36 }
 0x2b4   :  { %730 = vtanh.f32 %v492_v38 }
 0x2b5   :  { %v497_v42 = vpop.f32.mrb[2].mxu1  ;;  %732 = vtanh.f32 %v494_v40 }
 0x2b6   :  { %v498_v43 = vadd.f32 %v497_v42, %v401_v41  ;;  %v499_v44 = vpop.f32.mrb[3].mxu1 }
 0x2b7   :  { %v500_v45 = vadd.f32 %v499_v44, %v401_v41 }
 0x2b8   :  { %734 = vtanh.f32 %v498_v43 }
 0x2b9   :  { %736 = vtanh.f32 %v500_v45  ;;  %v503_v46 = vpop.f32.mrb[4].mxu1 }
 0x2ba   :  { %v504_v47 = vadd.f32 %v503_v46, %v406_v34  ;;  %v505_v48 = vpop.f32.mrb[5].mxu1 }
 0x2bb   :  { %v506_v49 = vadd.f32 %v505_v48, %v406_v34 }
 0x2bc   :  { %738 = vtanh.f32 %v504_v47 }
 0x2bd   :  { %v509_v51 = vpop.f32.mrb[6].mxu1  ;;  %740 = vtanh.f32 %v506_v49 }
 0x2be   :  { %v510_v52 = vadd.f32 %v509_v51, %v411_v50  ;;  %v511_v53 = vpop.f32.mrb[7].mxu1  ;;  %v731_v55 = vpop.eup %730 }
 0x2bf   :  { %v512_v54 = vadd.f32 %v511_v53, %v411_v50  ;;  %v733_v56 = vpop.eup %732 }
 0x2c0   :  { %742 = vtanh.f32 %v510_v52 }
 0x2c1   :  { %744 = vtanh.f32 %v512_v54 }
 0x2c2   :  { %v735_v57 = vpop.eup %734 }
 0x2c3   :  { %v737_v58 = vpop.eup %736  ;;  %v679_v59 = vpack.c.bf16 %v735_v57, %v731_v55 }
 0x2c4   :  { %v677_v60 = vpack.c.bf16 %v737_v58, %v733_v56 }
 0x2c6   :  { %678 = vmatprep.subr.bf16.mxu0 %v677_v60  ;;  %v739_v63 = vpop.eup %738 }
 0x2c7   :  { %680 = vmatpush1.bf16.msra.mxu0 %v679_v59  ;;  %v741_v0 = vpop.eup %740 }
 0x2ca   :  { %v743_v2 = vpop.eup %742 }
 0x2cb   :  { %v745_v3 = vpop.eup %744  ;;  %v683_v4 = vpack.c.bf16 %v743_v2, %v739_v63 }
 0x2cc   :  { %v681_v5 = vpack.c.bf16 %v745_v3, %v741_v0 }
 0x2ce   :  { %682 = vmatprep.subr.bf16.mxu0 %v681_v5 }
 0x2cf   :  { %684 = vmatpush1.bf16.msra.mxu0 %v683_v4 }
 0x2d2   :  { %660 = vmatmul.mubr.msk.f32.vlgmr.msra.gmra.mrb[8].mxu0 %vm273_vm0, %v522_v6 }
 0x3a5   :  { %v602_v12 = vpop.f32.mrb[8].mxu0 }
 0x3a6   :  { %v603_v13 = vadd.f32 %v602_v12, %v532_v11  ;;  %v604_v14 = vpop.f32.mrb[9].mxu0 }
 0x3a7   :  { %v605_v15 = vadd.f32 %v604_v14, %v532_v11 }
 0x3a9   :  { %v609_v17 = vcombine.low %v603_v13, %v605_v15 }
 0x3ab   :  { %v616_v18 = vrot.slane %v609_v17, %v615_v16 }
 0x3ad   :  { %v623_v19 = vrot.slane %v616_v18, %v615_v16 }
 0x3af   :  { %629 = vst.msk [vmem:[#allocation3] sm:$0x3] %vm627_vm1, %v623_v19 }
 0x3b0   :  { %757 = shalt.err (!%p754_p4)
}
 0x3b1   :  { %s758_s12 = scalar_lea.hbm %s1043_s7, 32 }
 0x3b2   :  { %p759_p5 = scmp.ne.s32.totalorder %s1043_s7, %s758_s12  ;;  %p762_p6 = scmp.lt.u32.totalorder %s758_s12, %s1043_s7 }
 0x3b4   :  { %p764_p7 = pnand %p762_p6, %p759_p5 }
 0x3b6   :  { %767 = shalt.err (!%p764_p7)
}
 0x3b7   :  { %639 = dma.vmem_to_hbm [thread:$0]  %s637_s10, 32, %s1043_s7, [#allocation4]  }
 0x3b8   :  { %768 = dma.done.wait [#allocation4], 32  }
 0x3b9   :  { %769 = vsyncadd [#allocation4], 4294967264 }
 0x3ba   :  { %643 = vsyncpa [#allocation4], 1 }

</bundles_post_ra>
